<compile_context>
chip_gen: v7x
topology: tpu7x:2x2x1
jax: 0.10.0
libtpu: 0.0.40
codegen_flags: <defaults>
</compile_context>

<pallas_src>
import jax
import jax.numpy as jnp
from jax.experimental import pallas as pl
from jax.experimental.pallas import tpu as pltpu

P = 128              # padded feature width == lane width
IN_A = 10            # dim of input_tensor_top_model_a
IN_B = 10            # dim of input_tensor_top_model_b
IN_TOTAL = IN_A + IN_B
NUM_CLASSES = 10
EPS = 1e-5
NEG_BIG = -1e30


def _top_model_kernel(x_ref, w_ref, vec_ref, o_ref):
    B = o_ref.shape[0]
    inv_b = 1.0 / B

    x20 = x_ref[...].astype(jnp.float32)                      # (B, 20)

    # Scatter the 20 real features into a zero-padded 128-lane slab with ONE tiny
    # placement matmul (keeps every later matmul/store lane-dense; padded lanes stay 0).
    row = jax.lax.broadcasted_iota(jnp.int32, (IN_TOTAL, P), 0)
    col = jax.lax.broadcasted_iota(jnp.int32, (IN_TOTAL, P), 1)
    place = (col == row).astype(jnp.float32)                   # (20, P)
    x = jnp.dot(x20, place, preferred_element_type=jnp.float32)  # (B, P)

    # Four fused (BatchNorm1d -> ReLU -> Linear) blocks.
    for k in range(4):
        v = vec_ref[k]                                         # (3, P): bias/gamma/beta
        bias = v[0:1, :]
        gamma = v[1:2, :]
        beta = v[2:3, :]

        # Single-pass training-mode batch statistics.
        s1 = jnp.sum(x, axis=0, keepdims=True)
        s2 = jnp.sum(x * x, axis=0, keepdims=True)
        mean = s1 * inv_b
        var = jnp.maximum(s2 * inv_b - mean * mean, 0.0)

        # BN affine folded into 2 per-element ops, then ReLU.
        # Padded-lane invariant: gamma=beta=0 -> scale=shift=0 -> lane stays 0.
        scale = gamma * jax.lax.rsqrt(var + EPS)               # (1, P)
        shift = beta - mean * scale                            # (1, P)
        h = jnp.maximum(x * scale + shift, 0.0)                # (B, P)

        # TODO(synk): bf16 operand fast path for v6e/v7x kept off to preserve <=1e-4
        # parity with the f32 PyTorch forward.
        x = jnp.dot(h, w_ref[k], preferred_element_type=jnp.float32) + bias

    # log_softmax over the 10 real classes (single mask; padded lanes underflow in exp).
    cls = jax.lax.broadcasted_iota(jnp.int32, (B, P), 1)
    z = jnp.where(cls < NUM_CLASSES, x, NEG_BIG)
    m = jnp.max(z, axis=1, keepdims=True)
    e = jnp.exp(z - m)
    lse = m + jnp.log(jnp.sum(e, axis=1, keepdims=True))
    o_ref[...] = (x - lse).astype(o_ref.dtype)


def pack_params(weights, biases, gammas, betas, padded_dim=P):
    """One-time packing (do NOT call per forward): transpose + zero-pad + stack.

    weights[k]: (out_k, in_k)   -- PyTorch nn.Linear layout
    biases[k]:  (out_k,)
    gammas[k], betas[k]: (in_k,) -- BatchNorm1d affine params
    Returns (w_pk (4,P,P) f32, vec_pk (4,3,P) f32 with rows [bias, gamma, beta]).
    """
    def pad_mat(w):
        wt = jnp.asarray(w, jnp.float32).T                     # (in, out)
        return jnp.zeros((padded_dim, padded_dim), jnp.float32).at[
            :wt.shape[0], :wt.shape[1]].set(wt)

    def pad_vec(v):
        v = jnp.asarray(v, jnp.float32)
        return jnp.zeros((padded_dim,), jnp.float32).at[:v.shape[0]].set(v)

    w_pk = jnp.stack([pad_mat(w) for w in weights])            # (4, P, P)
    vec_pk = jnp.stack([jnp.stack([pad_vec(b), pad_vec(g), pad_vec(be)])
                        for b, g, be in zip(biases, gammas, betas)])  # (4, 3, P)
    return w_pk, vec_pk


def _vmem_capacity_bytes():
    """Per-core VMEM capacity; conservative fallback if the query is unavailable."""
    try:
        return int(pltpu.get_tpu_info().vmem_capacity_bytes)
    except Exception:
        return 64 * 1024 * 1024   # smallest current generation (v7x per-TensorCore)


def top_model_forward(x_a, x_b, packed):
    w_pk, vec_pk = packed
    B = x_a.shape[0]

    # Trivial 80 B/row concat in the wrapper (NOT padded to 128 lanes here, so input
    # HBM traffic stays minimal); the kernel does the lane-padding placement.
    x20 = jnp.concatenate([x_a, x_b], axis=1)                  # (B, 20)

    # Generation-aware VMEM budget (training-mode BN keeps the whole batch resident).
    need_bytes = (
        B * P * 4 * 10            # resident activation + ~live (B,128) f32 temporaries
        + 4 * P * P * 4           # packed weights (single-buffered, grid-less call)
        + 4 * 3 * P * 4           # packed bias/gamma/beta
        + B * IN_TOTAL * 4        # input
        + B * P * 4               # output
        + (1 << 20)               # compiler-internal slack
    )
    budget = int(0.8 * _vmem_capacity_bytes())
    assert need_bytes <= budget, (
        "batch too large for the single-block BN path on this TPU generation; "
        "see TODO(synk) two-pass-BN batch-tiled variant at top of file")
    vmem_limit = min(budget, max(need_bytes, 32 * 1024 * 1024))

    flops = 2 * B * IN_TOTAL * P + 4 * 2 * B * P * P
    bytes_accessed = 4 * (B * IN_TOTAL + 4 * P * P + 4 * 3 * P + B * P)

    out_padded = pl.pallas_call(
        _top_model_kernel,
        out_shape=jax.ShapeDtypeStruct((B, P), jnp.float32),
        # Grid-less call: every operand is mapped whole into VMEM exactly once
        # (no double-buffering of the 256 KiB weight block or the activations).
        in_specs=[
            pl.BlockSpec(memory_space=pltpu.MemorySpace.VMEM),   # x20
            pl.BlockSpec(memory_space=pltpu.MemorySpace.VMEM),   # stacked W^T (padded)
            pl.BlockSpec(memory_space=pltpu.MemorySpace.VMEM),   # stacked bias/gamma/beta
        ],
        out_specs=pl.BlockSpec(memory_space=pltpu.MemorySpace.VMEM),
        compiler_params=pltpu.CompilerParams(vmem_limit_bytes=int(vmem_limit)),
        cost_estimate=pl.CostEstimate(
            flops=int(flops),
            transcendentals=int(B * P + B + 4 * P),
            bytes_accessed=int(bytes_accessed)),
    )(x20, w_pk, vec_pk)

    # TODO(synk): fuse the downstream NLL/loss (or let the consumer accept the padded
    # (B,128) slab) to avoid this extra HBM slice pass at large batch.
    return out_padded[:, :NUM_CLASSES]


if __name__ == "__main__":
    batch = 4
    key = jax.random.PRNGKey(0)
    keys = jax.random.split(key, 8)

    x_a = jax.random.normal(keys[0], (batch, IN_A), dtype=jnp.float32)
    x_b = jax.random.normal(keys[1], (batch, IN_B), dtype=jnp.float32)

    # Synthetic deterministic parameters mirroring the module (kaiming-normal weights).
    layer_dims = [(20, 20), (10, 20), (10, 10), (10, 10)]      # (out, in) PyTorch layout
    weights, biases, gammas, betas = [], [], [], []
    for li, (out_d, in_d) in enumerate(layer_dims):
        kw, kb, kg, kbe = jax.random.split(keys[2 + li], 4)
        std = (2.0 / in_d) ** 0.5
        weights.append(std * jax.random.normal(kw, (out_d, in_d), dtype=jnp.float32))
        bound = 1.0 / (in_d ** 0.5)
        biases.append(jax.random.uniform(kb, (out_d,), minval=-bound, maxval=bound,
                                         dtype=jnp.float32))
        gammas.append(1.0 + 0.1 * jax.random.normal(kg, (in_d,), dtype=jnp.float32))
        betas.append(0.1 * jax.random.normal(kbe, (in_d,), dtype=jnp.float32))

    packed = pack_params(weights, biases, gammas, betas)       # one-time packing

    out = top_model_forward(x_a, x_b, packed)
    jax.block_until_ready(out)

    # Pure-JAX reference (training-mode BN with biased batch variance).
    def reference(xa, xb):
        x = jnp.concatenate([xa, xb], axis=1)
        for k in range(4):
            mean = jnp.mean(x, axis=0, keepdims=True)
            var = jnp.mean((x - mean) ** 2, axis=0, keepdims=True)
            xn = (x - mean) / jnp.sqrt(var + EPS) * gammas[k] + betas[k]
            x = jnp.maximum(xn, 0.0) @ weights[k].T + biases[k]
        return jax.nn.log_softmax(x, axis=1)

    ref = reference(x_a, x_b)
    assert out.shape == (batch, NUM_CLASSES)
    assert jnp.allclose(out, ref, atol=1e-4, rtol=1e-4), (out, ref)

    print("KERNEL_OK")
</pallas_src>

<mosaic_0001>
module attributes {stable_mosaic.version = 11 : i64} {
  func.func @_top_model_kernel(%arg0: memref<4x20xf32, #tpu.memory_space<vmem>>, %arg1: memref<4x128x128xf32, #tpu.memory_space<vmem>>, %arg2: memref<4x3x128xf32, #tpu.memory_space<vmem>>, %arg3: memref<4x128xf32, #tpu.memory_space<vmem>>) attributes {dimension_semantics = [], scalar_prefetch = 0 : i64, scratch_operands = 0 : i64, tpu.core_type = #tpu.core_type<tc>} {
    %c0 = arith.constant 0 : index
    %c0_0 = arith.constant 0 : index
    %0 = vector.load %arg0[%c0, %c0_0] : memref<4x20xf32, #tpu.memory_space<vmem>>, vector<4x20xf32>
    %1 = tpu.iota {dimensions = array<i32: 0>} : vector<20x128xi32>
    %2 = tpu.iota {dimensions = array<i32: 1>} : vector<20x128xi32>
    %3 = arith.cmpi eq, %2, %1 : vector<20x128xi32>
    %4 = arith.extui %3 : vector<20x128xi1> to vector<20x128xi32>
    %5 = arith.sitofp %4 : vector<20x128xi32> to vector<20x128xf32>
    %cst = arith.constant dense<0.000000e+00> : vector<4x128xf32>
    %6 = tpu.matmul %0, %5, %cst {dimension_numbers = #tpu.dot_dimension_numbers<[1], [0], [0], [1], [0, 0, 1, 1], [], []>} : vector<4x20xf32>, vector<20x128xf32>, vector<4x128xf32> -> vector<4x128xf32>
    %c0_1 = arith.constant 0 : index
    %c0_2 = arith.constant 0 : index
    %c0_3 = arith.constant 0 : index
    %7 = vector.load %arg2[%c0_1, %c0_2, %c0_3] : memref<4x3x128xf32, #tpu.memory_space<vmem>>, vector<1x3x128xf32>
    %8 = vector.shape_cast %7 : vector<1x3x128xf32> to vector<3x128xf32>
    %9 = vector.extract_strided_slice %8 {offsets = [0, 0], sizes = [1, 128], strides = [1, 1]} : vector<3x128xf32> to vector<1x128xf32>
    %10 = vector.extract_strided_slice %8 {offsets = [1, 0], sizes = [1, 128], strides = [1, 1]} : vector<3x128xf32> to vector<1x128xf32>
    %11 = vector.extract_strided_slice %8 {offsets = [2, 0], sizes = [1, 128], strides = [1, 1]} : vector<3x128xf32> to vector<1x128xf32>
    %cst_4 = arith.constant dense<0.000000e+00> : vector<128xf32>
    %12 = vector.multi_reduction <add>, %6, %cst_4 [0] : vector<4x128xf32> to vector<128xf32>
    %13 = vector.shape_cast %12 : vector<128xf32> to vector<1x128xf32>
    %14 = arith.mulf %6, %6 : vector<4x128xf32>
    %cst_5 = arith.constant dense<0.000000e+00> : vector<128xf32>
    %15 = vector.multi_reduction <add>, %14, %cst_5 [0] : vector<4x128xf32> to vector<128xf32>
    %16 = vector.shape_cast %15 : vector<128xf32> to vector<1x128xf32>
    %cst_6 = arith.constant 2.500000e-01 : f32
    %17 = vector.broadcast %cst_6 : f32 to vector<1x128xf32>
    %18 = arith.mulf %13, %17 : vector<1x128xf32>
    %cst_7 = arith.constant 2.500000e-01 : f32
    %19 = vector.broadcast %cst_7 : f32 to vector<1x128xf32>
    %20 = arith.mulf %16, %19 : vector<1x128xf32>
    %21 = arith.mulf %18, %18 : vector<1x128xf32>
    %22 = arith.subf %20, %21 : vector<1x128xf32>
    %cst_8 = arith.constant 0.000000e+00 : f32
    %23 = vector.broadcast %cst_8 : f32 to vector<1x128xf32>
    %24 = arith.maximumf %22, %23 : vector<1x128xf32>
    %cst_9 = arith.constant 9.99999974E-6 : f32
    %25 = vector.broadcast %cst_9 : f32 to vector<1x128xf32>
    %26 = arith.addf %24, %25 : vector<1x128xf32>
    %27 = math.rsqrt %26 : vector<1x128xf32>
    %28 = arith.mulf %10, %27 : vector<1x128xf32>
    %29 = arith.mulf %18, %28 : vector<1x128xf32>
    %30 = arith.subf %11, %29 : vector<1x128xf32>
    %31 = vector.broadcast %28 : vector<1x128xf32> to vector<4x128xf32>
    %32 = arith.mulf %6, %31 : vector<4x128xf32>
    %33 = vector.broadcast %30 : vector<1x128xf32> to vector<4x128xf32>
    %34 = arith.addf %32, %33 : vector<4x128xf32>
    %cst_10 = arith.constant 0.000000e+00 : f32
    %35 = vector.broadcast %cst_10 : f32 to vector<4x128xf32>
    %36 = arith.maximumf %34, %35 : vector<4x128xf32>
    %c0_11 = arith.constant 0 : index
    %c0_12 = arith.constant 0 : index
    %c0_13 = arith.constant 0 : index
    %37 = vector.load %arg1[%c0_11, %c0_12, %c0_13] : memref<4x128x128xf32, #tpu.memory_space<vmem>>, vector<1x128x128xf32>
    %38 = vector.shape_cast %37 : vector<1x128x128xf32> to vector<128x128xf32>
    %cst_14 = arith.constant dense<0.000000e+00> : vector<4x128xf32>
    %39 = tpu.matmul %36, %38, %cst_14 {dimension_numbers = #tpu.dot_dimension_numbers<[1], [0], [0], [1], [0, 0, 1, 1], [], []>} : vector<4x128xf32>, vector<128x128xf32>, vector<4x128xf32> -> vector<4x128xf32>
    %40 = vector.broadcast %9 : vector<1x128xf32> to vector<4x128xf32>
    %41 = arith.addf %39, %40 : vector<4x128xf32>
    %c1 = arith.constant 1 : index
    %c0_15 = arith.constant 0 : index
    %c0_16 = arith.constant 0 : index
    %42 = vector.load %arg2[%c1, %c0_15, %c0_16] : memref<4x3x128xf32, #tpu.memory_space<vmem>>, vector<1x3x128xf32>
    %43 = vector.shape_cast %42 : vector<1x3x128xf32> to vector<3x128xf32>
    %44 = vector.extract_strided_slice %43 {offsets = [0, 0], sizes = [1, 128], strides = [1, 1]} : vector<3x128xf32> to vector<1x128xf32>
    %45 = vector.extract_strided_slice %43 {offsets = [1, 0], sizes = [1, 128], strides = [1, 1]} : vector<3x128xf32> to vector<1x128xf32>
    %46 = vector.extract_strided_slice %43 {offsets = [2, 0], sizes = [1, 128], strides = [1, 1]} : vector<3x128xf32> to vector<1x128xf32>
    %cst_17 = arith.constant dense<0.000000e+00> : vector<128xf32>
    %47 = vector.multi_reduction <add>, %41, %cst_17 [0] : vector<4x128xf32> to vector<128xf32>
    %48 = vector.shape_cast %47 : vector<128xf32> to vector<1x128xf32>
    %49 = arith.mulf %41, %41 : vector<4x128xf32>
    %cst_18 = arith.constant dense<0.000000e+00> : vector<128xf32>
    %50 = vector.multi_reduction <add>, %49, %cst_18 [0] : vector<4x128xf32> to vector<128xf32>
    %51 = vector.shape_cast %50 : vector<128xf32> to vector<1x128xf32>
    %cst_19 = arith.constant 2.500000e-01 : f32
    %52 = vector.broadcast %cst_19 : f32 to vector<1x128xf32>
    %53 = arith.mulf %48, %52 : vector<1x128xf32>
    %cst_20 = arith.constant 2.500000e-01 : f32
    %54 = vector.broadcast %cst_20 : f32 to vector<1x128xf32>
    %55 = arith.mulf %51, %54 : vector<1x128xf32>
    %56 = arith.mulf %53, %53 : vector<1x128xf32>
    %57 = arith.subf %55, %56 : vector<1x128xf32>
    %cst_21 = arith.constant 0.000000e+00 : f32
    %58 = vector.broadcast %cst_21 : f32 to vector<1x128xf32>
    %59 = arith.maximumf %57, %58 : vector<1x128xf32>
    %cst_22 = arith.constant 9.99999974E-6 : f32
    %60 = vector.broadcast %cst_22 : f32 to vector<1x128xf32>
    %61 = arith.addf %59, %60 : vector<1x128xf32>
    %62 = math.rsqrt %61 : vector<1x128xf32>
    %63 = arith.mulf %45, %62 : vector<1x128xf32>
    %64 = arith.mulf %53, %63 : vector<1x128xf32>
    %65 = arith.subf %46, %64 : vector<1x128xf32>
    %66 = vector.broadcast %63 : vector<1x128xf32> to vector<4x128xf32>
    %67 = arith.mulf %41, %66 : vector<4x128xf32>
    %68 = vector.broadcast %65 : vector<1x128xf32> to vector<4x128xf32>
    %69 = arith.addf %67, %68 : vector<4x128xf32>
    %cst_23 = arith.constant 0.000000e+00 : f32
    %70 = vector.broadcast %cst_23 : f32 to vector<4x128xf32>
    %71 = arith.maximumf %69, %70 : vector<4x128xf32>
    %c1_24 = arith.constant 1 : index
    %c0_25 = arith.constant 0 : index
    %c0_26 = arith.constant 0 : index
    %72 = vector.load %arg1[%c1_24, %c0_25, %c0_26] : memref<4x128x128xf32, #tpu.memory_space<vmem>>, vector<1x128x128xf32>
    %73 = vector.shape_cast %72 : vector<1x128x128xf32> to vector<128x128xf32>
    %cst_27 = arith.constant dense<0.000000e+00> : vector<4x128xf32>
    %74 = tpu.matmul %71, %73, %cst_27 {dimension_numbers = #tpu.dot_dimension_numbers<[1], [0], [0], [1], [0, 0, 1, 1], [], []>} : vector<4x128xf32>, vector<128x128xf32>, vector<4x128xf32> -> vector<4x128xf32>
    %75 = vector.broadcast %44 : vector<1x128xf32> to vector<4x128xf32>
    %76 = arith.addf %74, %75 : vector<4x128xf32>
    %c2 = arith.constant 2 : index
    %c0_28 = arith.constant 0 : index
    %c0_29 = arith.constant 0 : index
    %77 = vector.load %arg2[%c2, %c0_28, %c0_29] : memref<4x3x128xf32, #tpu.memory_space<vmem>>, vector<1x3x128xf32>
    %78 = vector.shape_cast %77 : vector<1x3x128xf32> to vector<3x128xf32>
    %79 = vector.extract_strided_slice %78 {offsets = [0, 0], sizes = [1, 128], strides = [1, 1]} : vector<3x128xf32> to vector<1x128xf32>
    %80 = vector.extract_strided_slice %78 {offsets = [1, 0], sizes = [1, 128], strides = [1, 1]} : vector<3x128xf32> to vector<1x128xf32>
    %81 = vector.extract_strided_slice %78 {offsets = [2, 0], sizes = [1, 128], strides = [1, 1]} : vector<3x128xf32> to vector<1x128xf32>
    %cst_30 = arith.constant dense<0.000000e+00> : vector<128xf32>
    %82 = vector.multi_reduction <add>, %76, %cst_30 [0] : vector<4x128xf32> to vector<128xf32>
    %83 = vector.shape_cast %82 : vector<128xf32> to vector<1x128xf32>
    %84 = arith.mulf %76, %76 : vector<4x128xf32>
    %cst_31 = arith.constant dense<0.000000e+00> : vector<128xf32>
    %85 = vector.multi_reduction <add>, %84, %cst_31 [0] : vector<4x128xf32> to vector<128xf32>
    %86 = vector.shape_cast %85 : vector<128xf32> to vector<1x128xf32>
    %cst_32 = arith.constant 2.500000e-01 : f32
    %87 = vector.broadcast %cst_32 : f32 to vector<1x128xf32>
    %88 = arith.mulf %83, %87 : vector<1x128xf32>
    %cst_33 = arith.constant 2.500000e-01 : f32
    %89 = vector.broadcast %cst_33 : f32 to vector<1x128xf32>
    %90 = arith.mulf %86, %89 : vector<1x128xf32>
    %91 = arith.mulf %88, %88 : vector<1x128xf32>
    %92 = arith.subf %90, %91 : vector<1x128xf32>
    %cst_34 = arith.constant 0.000000e+00 : f32
    %93 = vector.broadcast %cst_34 : f32 to vector<1x128xf32>
    %94 = arith.maximumf %92, %93 : vector<1x128xf32>
    %cst_35 = arith.constant 9.99999974E-6 : f32
    %95 = vector.broadcast %cst_35 : f32 to vector<1x128xf32>
    %96 = arith.addf %94, %95 : vector<1x128xf32>
    %97 = math.rsqrt %96 : vector<1x128xf32>
    %98 = arith.mulf %80, %97 : vector<1x128xf32>
    %99 = arith.mulf %88, %98 : vector<1x128xf32>
    %100 = arith.subf %81, %99 : vector<1x128xf32>
    %101 = vector.broadcast %98 : vector<1x128xf32> to vector<4x128xf32>
    %102 = arith.mulf %76, %101 : vector<4x128xf32>
    %103 = vector.broadcast %100 : vector<1x128xf32> to vector<4x128xf32>
    %104 = arith.addf %102, %103 : vector<4x128xf32>
    %cst_36 = arith.constant 0.000000e+00 : f32
    %105 = vector.broadcast %cst_36 : f32 to vector<4x128xf32>
    %106 = arith.maximumf %104, %105 : vector<4x128xf32>
    %c2_37 = arith.constant 2 : index
    %c0_38 = arith.constant 0 : index
    %c0_39 = arith.constant 0 : index
    %107 = vector.load %arg1[%c2_37, %c0_38, %c0_39] : memref<4x128x128xf32, #tpu.memory_space<vmem>>, vector<1x128x128xf32>
    %108 = vector.shape_cast %107 : vector<1x128x128xf32> to vector<128x128xf32>
    %cst_40 = arith.constant dense<0.000000e+00> : vector<4x128xf32>
    %109 = tpu.matmul %106, %108, %cst_40 {dimension_numbers = #tpu.dot_dimension_numbers<[1], [0], [0], [1], [0, 0, 1, 1], [], []>} : vector<4x128xf32>, vector<128x128xf32>, vector<4x128xf32> -> vector<4x128xf32>
    %110 = vector.broadcast %79 : vector<1x128xf32> to vector<4x128xf32>
    %111 = arith.addf %109, %110 : vector<4x128xf32>
    %c3 = arith.constant 3 : index
    %c0_41 = arith.constant 0 : index
    %c0_42 = arith.constant 0 : index
    %112 = vector.load %arg2[%c3, %c0_41, %c0_42] : memref<4x3x128xf32, #tpu.memory_space<vmem>>, vector<1x3x128xf32>
    %113 = vector.shape_cast %112 : vector<1x3x128xf32> to vector<3x128xf32>
    %114 = vector.extract_strided_slice %113 {offsets = [0, 0], sizes = [1, 128], strides = [1, 1]} : vector<3x128xf32> to vector<1x128xf32>
    %115 = vector.extract_strided_slice %113 {offsets = [1, 0], sizes = [1, 128], strides = [1, 1]} : vector<3x128xf32> to vector<1x128xf32>
    %116 = vector.extract_strided_slice %113 {offsets = [2, 0], sizes = [1, 128], strides = [1, 1]} : vector<3x128xf32> to vector<1x128xf32>
    %cst_43 = arith.constant dense<0.000000e+00> : vector<128xf32>
    %117 = vector.multi_reduction <add>, %111, %cst_43 [0] : vector<4x128xf32> to vector<128xf32>
    %118 = vector.shape_cast %117 : vector<128xf32> to vector<1x128xf32>
    %119 = arith.mulf %111, %111 : vector<4x128xf32>
    %cst_44 = arith.constant dense<0.000000e+00> : vector<128xf32>
    %120 = vector.multi_reduction <add>, %119, %cst_44 [0] : vector<4x128xf32> to vector<128xf32>
    %121 = vector.shape_cast %120 : vector<128xf32> to vector<1x128xf32>
    %cst_45 = arith.constant 2.500000e-01 : f32
    %122 = vector.broadcast %cst_45 : f32 to vector<1x128xf32>
    %123 = arith.mulf %118, %122 : vector<1x128xf32>
    %cst_46 = arith.constant 2.500000e-01 : f32
    %124 = vector.broadcast %cst_46 : f32 to vector<1x128xf32>
    %125 = arith.mulf %121, %124 : vector<1x128xf32>
    %126 = arith.mulf %123, %123 : vector<1x128xf32>
    %127 = arith.subf %125, %126 : vector<1x128xf32>
    %cst_47 = arith.constant 0.000000e+00 : f32
    %128 = vector.broadcast %cst_47 : f32 to vector<1x128xf32>
    %129 = arith.maximumf %127, %128 : vector<1x128xf32>
    %cst_48 = arith.constant 9.99999974E-6 : f32
    %130 = vector.broadcast %cst_48 : f32 to vector<1x128xf32>
    %131 = arith.addf %129, %130 : vector<1x128xf32>
    %132 = math.rsqrt %131 : vector<1x128xf32>
    %133 = arith.mulf %115, %132 : vector<1x128xf32>
    %134 = arith.mulf %123, %133 : vector<1x128xf32>
    %135 = arith.subf %116, %134 : vector<1x128xf32>
    %136 = vector.broadcast %133 : vector<1x128xf32> to vector<4x128xf32>
    %137 = arith.mulf %111, %136 : vector<4x128xf32>
    %138 = vector.broadcast %135 : vector<1x128xf32> to vector<4x128xf32>
    %139 = arith.addf %137, %138 : vector<4x128xf32>
    %cst_49 = arith.constant 0.000000e+00 : f32
    %140 = vector.broadcast %cst_49 : f32 to vector<4x128xf32>
    %141 = arith.maximumf %139, %140 : vector<4x128xf32>
    %c3_50 = arith.constant 3 : index
    %c0_51 = arith.constant 0 : index
    %c0_52 = arith.constant 0 : index
    %142 = vector.load %arg1[%c3_50, %c0_51, %c0_52] : memref<4x128x128xf32, #tpu.memory_space<vmem>>, vector<1x128x128xf32>
    %143 = vector.shape_cast %142 : vector<1x128x128xf32> to vector<128x128xf32>
    %cst_53 = arith.constant dense<0.000000e+00> : vector<4x128xf32>
    %144 = tpu.matmul %141, %143, %cst_53 {dimension_numbers = #tpu.dot_dimension_numbers<[1], [0], [0], [1], [0, 0, 1, 1], [], []>} : vector<4x128xf32>, vector<128x128xf32>, vector<4x128xf32> -> vector<4x128xf32>
    %145 = vector.broadcast %114 : vector<1x128xf32> to vector<4x128xf32>
    %146 = arith.addf %144, %145 : vector<4x128xf32>
    %147 = tpu.iota {dimensions = array<i32: 1>} : vector<4x128xi32>
    %c10_i32 = arith.constant 10 : i32
    %148 = vector.broadcast %c10_i32 : i32 to vector<4x128xi32>
    %149 = arith.cmpi slt, %147, %148 : vector<4x128xi32>
    %cst_54 = arith.constant -1.000000e+30 : f32
    %150 = vector.broadcast %cst_54 : f32 to vector<4x128xf32>
    %151 = arith.select %149, %146, %150 : vector<4x128xi1>, vector<4x128xf32>
    %cst_55 = arith.constant dense<0xFF800000> : vector<4xf32>
    %152 = vector.multi_reduction <maximumf>, %151, %cst_55 [1] : vector<4x128xf32> to vector<4xf32>
    %153 = vector.shape_cast %152 : vector<4xf32> to vector<4x1xf32>
    %154 = vector.broadcast %153 : vector<4x1xf32> to vector<4x128xf32>
    %155 = arith.subf %151, %154 : vector<4x128xf32>
    %156 = math.exp %155 : vector<4x128xf32>
    %cst_56 = arith.constant dense<0.000000e+00> : vector<4xf32>
    %157 = vector.multi_reduction <add>, %156, %cst_56 [1] : vector<4x128xf32> to vector<4xf32>
    %158 = vector.shape_cast %157 : vector<4xf32> to vector<4x1xf32>
    %159 = math.log %158 : vector<4x1xf32>
    %160 = arith.addf %153, %159 : vector<4x1xf32>
    %161 = vector.broadcast %160 : vector<4x1xf32> to vector<4x128xf32>
    %162 = arith.subf %146, %161 : vector<4x128xf32>
    %c0_57 = arith.constant 0 : index
    %c0_58 = arith.constant 0 : index
    %163 = vector.load %arg3[%c0_57, %c0_58] : memref<4x128xf32, #tpu.memory_space<vmem>>, vector<4x128xf32>
    tpu.vector_store %arg3[%c0_57, %c0_58], %162 {strides = array<i32>} : memref<4x128xf32, #tpu.memory_space<vmem>>, vector<4x128xf32>,
    return
  }
}

</mosaic_0001>

<bundles_post_ra>
// kernel: tpu_custom_call.1
= control target key start
LH: loop header
LB: loop body
LE: loop exit
PB: predicated region body
PF: predicated region fallthrough
CT: control target
= control target key end

     0   :  { %8 = vsyncpa [#allocation3], 0  ;;  %s1233_s0 = inlined_call_operand.vmem [shape: f32[4,20], index: 0, kind: input, shape index: {}]   ;;  %s1234_s1 = inlined_call_operand.hbm [shape: f32[4,128,128], index: 1, kind: input, shape index: {}]   ;;  %s1235_s2 = inlined_call_operand.vmem [shape: f32[4,3,128], index: 2, kind: input, shape index: {}]   ;;  %s1236_s3 = inlined_call_operand.hbm [shape: f32[4,128], index: 3, kind: output, shape index: {}]  }
   0x1   :  { %9 = vsyncpa [#allocation4], 0  ;;  %s1078_s12 = smov [#allocation2]   ;;  %s1030_s16 = scalar_lea.hbm %s1234_s1, 8192 }
   0x2   :  { %s17_s13 = sshll.u32 %s1078_s12, 4  ;;  %p1031_p0 = scmp.ne.s32.totalorder %s1234_s1, %s1030_s16  ;;  %s18_s13 = int_to_ptr.vmem [resolvable:$true] %s17_s13 }
   0x3   :  { %p1034_p1 = scmp.lt.u32.totalorder %s1030_s16, %s1234_s1 }
   0x5   :  { %p1036_p2 = pnand %p1034_p1, %p1031_p0 }
   0x7   :  { %1039 = shalt.err (!%p1036_p2)
}
   0x8   :  { %s1040_s21 = scalar_lea.vmem %s18_s13, 8192  ;;  %p1045_p4 = scmp.lt.s32.totalorder %s18_s13, %s18_s13 }
   0x9   :  { %p1041_p3 = scmp.ne.s32.totalorder %s18_s13, %s1040_s21  ;;  %p1046_p5 = scmp.lt.s32.totalorder %s1040_s21, %s1040_s21 }
   0xb   :  { %p1047_p6 = por %p1046_p5, %p1045_p4 }
   0xd   :  { %p1048_p7 = pnand %p1047_p6, %p1041_p3 }
   0xf   :  { %1051 = shalt.err (!%p1048_p7)
}
  0x10   :  { %s1079_s22 = smov 128   ;;  %s1080_s23 = smov 8  }
  0x11   :  { %23 = dma.hbm_to_vmem [thread:$0]  %s1234_s1, 8192, %s18_s13, [#allocation3], %s1079_s22, %s1079_s22, %s1080_s23  }
  0x12   :  { %1074 = dma.done.wait [#allocation3], 8192  }
  0x13   :  { %1075 = vsyncadd [#allocation3], 4294959104  ;;  %v30_v0 = vlaneseq  ;;  %v1081_v1 = vmov 0.0|0.0   ;;  %vm1082_vm0 = vmmov 0   ;;  %v1083_v4 = vmov 0.0   ;;  %v163_v10 = vld [vmem:[#allocation2] sm:$0xff] }
  0x14   :  { %911 = vmatprep.subr.bf16.mxu0 %v1081_v1  ;;  %914 = vmatprep.subr.bf16.mxu1 %v1081_v1  ;;  %v1084_v7 = vmov 1.0|1.0   ;;  %vm49_vm5 = vcmask 1043456   ;;  %v29_v9 = vld [vmem:[%s1233_s0] sm:$0xf]  ;;  %vm45_vm6 = vcmask 162816  }
  0x15   :  { %v1120_v2 = vshrl.u32 %v30_v0, 7  ;;  %v1122_v3 = vand.u32 127, %v30_v0  ;;  %768 = vmatprep.mubr.msk.f32.mxu0 %vm1082_vm0, %v1083_v4  ;;  %803 = vmatprep.mubr.msk.f32.mxu1 %vm1082_vm0, %v1083_v4  ;;  %v164_v11 = vld [vmem:[#allocation2 + $0x8] sm:$0xff]  ;;  %v165_v13 = vld [vmem:[#allocation2 + $0x10] sm:$0xff]  ;;  %v166_v14 = vld [vmem:[#allocation2 + $0x18] sm:$0xff] }
  0x16   :  { %v915_v12 = vpack.c.bf16 %v164_v11, %v163_v10  ;;  %v918_v15 = vpack.c.bf16 %v166_v14, %v165_v13  ;;  %v167_v16 = vld [vmem:[#allocation2 + $0x20] sm:$0xff]  ;;  %v168_v17 = vld [vmem:[#allocation2 + $0x28] sm:$0xff]  ;;  %v169_v19 = vld [vmem:[#allocation2 + $0x30] sm:$0xff] }
  0x17   :  { %v32_v5 = vadd.s32 8, %v1120_v2  ;;  %vm36_vm1 = vcmp.eq.s32.totalorder %v1122_v3, %v1120_v2  ;;  %v33_v6 = vadd.s32 16, %v1120_v2  ;;  %v921_v18 = vpack.c.bf16 %v168_v17, %v167_v16  ;;  %v170_v20 = vld [vmem:[#allocation2 + $0x38] sm:$0xff]  ;;  %v171_v22 = vld [vmem:[#allocation2 + $0x40] sm:$0xff]  ;;  %v172_v23 = vld [vmem:[#allocation2 + $0x48] sm:$0xff] }
  0x18   :  { %916 = vmatpush3.bf16.msra.mxu1 %v915_v12  ;;  %v924_v21 = vpack.c.bf16 %v170_v20, %v169_v19  ;;  %v927_v24 = vpack.c.bf16 %v172_v23, %v171_v22  ;;  %v173_v25 = vld [vmem:[#allocation2 + $0x50] sm:$0xff]  ;;  %v174_v26 = vld [vmem:[#allocation2 + $0x58] sm:$0xff]  ;;  %v175_v28 = vld [vmem:[#allocation2 + $0x60] sm:$0xff]  ;;  %v1157_v60 = vsub.s32 1, %v1120_v2  ;;  %v1161_v0 = vsub.s32 2, %v1120_v2 }
  0x19   :  { %vm37_vm2 = vcmp.eq.s32.totalorder %v1122_v3, %v32_v5  ;;  %vm38_vm3 = vcmp.eq.s32.totalorder %v1122_v3, %v33_v6  ;;  %917 = vmatprep.subr.bf16.mxu1 %v1081_v1  ;;  %v930_v27 = vpack.c.bf16 %v174_v26, %v173_v25  ;;  %v176_v29 = vld [vmem:[#allocation2 + $0x68] sm:$0xff]  ;;  %v177_v30 = vld [vmem:[#allocation2 + $0x70] sm:$0xff]  ;;  %v178_v32 = vld [vmem:[#allocation2 + $0x78] sm:$0xff]  ;;  %vm649_vm7 = vcmp.lt.s32.totalorder %v1122_v3, 10 }
  0x1a   :  { %vm912_vm4 = vmpackc.low %vm37_vm2, %vm36_vm1  ;;  %v682_v8 = vsel %vm38_vm3, 1.0, %v1083_v4  ;;  %v933_v31 = vpack.c.bf16 %v176_v29, %v175_v28  ;;  %v936_v33 = vpack.c.bf16 %v178_v32, %v177_v30  ;;  %v123_v57 = vld [vmem:[%s1235_s2] sm:$0x7]  ;;  %v296_v11 = vld [vmem:[#allocation2 + $0x88] sm:$0xff] }
  0x1b   :  { %913 = vmatpush3.bf16.msk.msra.mxu0 %vm912_vm4, %v1084_v7  ;;  %v295_v10 = vld [vmem:[#allocation2 + $0x80] sm:$0xff]  ;;  %v297_v13 = vld [vmem:[#allocation2 + $0x90] sm:$0xff]  ;;  %v298_v14 = vld [vmem:[#allocation2 + $0x98] sm:$0xff] }
  0x1c   :  { %766 = vmatprep.subr.mxu0 %v1083_v4  ;;  %919 = vmatpush3.bf16.msra.mxu1 %v918_v15  ;;  %v939_v12 = vpack.c.bf16 %v296_v11, %v295_v10  ;;  %v942_v15 = vpack.c.bf16 %v298_v14, %v297_v13  ;;  %v299_v16 = vld [vmem:[#allocation2 + $0xa0] sm:$0xff]  ;;  %v300_v17 = vld [vmem:[#allocation2 + $0xa8] sm:$0xff]  ;;  %v301_v19 = vld [vmem:[#allocation2 + $0xb0] sm:$0xff] }
  0x1d   :  { %920 = vmatprep.subr.bf16.mxu1 %v1081_v1  ;;  %v302_v20 = vld [vmem:[#allocation2 + $0xb8] sm:$0xff]  ;;  %v303_v22 = vld [vmem:[#allocation2 + $0xc0] sm:$0xff]  ;;  %v304_v23 = vld [vmem:[#allocation2 + $0xc8] sm:$0xff] }
  0x1e   :  { %v305_v25 = vld [vmem:[#allocation2 + $0xd0] sm:$0xff]  ;;  %v306_v26 = vld [vmem:[#allocation2 + $0xd8] sm:$0xff]  ;;  %v307_v28 = vld [vmem:[#allocation2 + $0xe0] sm:$0xff] }
  0x1f   :  { %767 = vmatpush3.msk.msra.mxu0 %vm49_vm5, %v682_v8  ;;  %v308_v29 = vld [vmem:[#allocation2 + $0xe8] sm:$0xff]  ;;  %v310_v32 = vld [vmem:[#allocation2 + $0xf8] sm:$0xff] }
  0x20   :  { %769 = vmatmul.mubr.msk.f32.vlgmr.msra.gmra.mrb[0].mxu0 %vm45_vm6, %v29_v9  ;;  %938 = vmatprep.subr.bf16.mxu0 %v1081_v1  ;;  %v957_v30 = vpack.c.bf16 %v308_v29, %v307_v28  ;;  %v428_v13 = vld [vmem:[#allocation2 + $0x108] sm:$0xff]  ;;  %v439_v29 = vld [vmem:[#allocation2 + $0x160] sm:$0xff] }
  0x21   :  { %838 = vmatprep.mubr.msk.f32.mxu0 %vm1082_vm0, %v1083_v4  ;;  %922 = vmatpush3.bf16.msra.mxu1 %v921_v18  ;;  %v945_v18 = vpack.c.bf16 %v300_v17, %v299_v16  ;;  %v430_v16 = vld [vmem:[#allocation2 + $0x118] sm:$0xff] }
  0x22   :  { %923 = vmatprep.subr.bf16.mxu1 %v1081_v1  ;;  %940 = vmatpush3.bf16.msra.mxu0 %v939_v12  ;;  %v427_v12 = vld [vmem:[#allocation2 + $0x100] sm:$0xff] }
  0x23   :  { %941 = vmatprep.subr.bf16.mxu0 %v1081_v1  ;;  %v963_v14 = vpack.c.bf16 %v428_v13, %v427_v12  ;;  %v559_v13 = vld [vmem:[#allocation2 + $0x180] sm:$0xff] }
  0x25   :  { %925 = vmatpush3.bf16.msra.mxu1 %v924_v21  ;;  %v948_v21 = vpack.c.bf16 %v302_v20, %v301_v19  ;;  %v432_v19 = vld [vmem:[#allocation2 + $0x128] sm:$0xff] }
  0x26   :  { %926 = vmatprep.subr.bf16.mxu1 %v1081_v1  ;;  %943 = vmatpush3.bf16.msra.mxu0 %v942_v15  ;;  %v429_v15 = vld [vmem:[#allocation2 + $0x110] sm:$0xff] }
  0x27   :  { %944 = vmatprep.subr.bf16.mxu0 %v1081_v1  ;;  %v966_v17 = vpack.c.bf16 %v430_v16, %v429_v15  ;;  %v561_v16 = vld [vmem:[#allocation2 + $0x190] sm:$0xff] }
  0x29   :  { %928 = vmatpush3.bf16.msra.mxu1 %v927_v24  ;;  %v951_v24 = vpack.c.bf16 %v304_v23, %v303_v22  ;;  %v435_v23 = vld [vmem:[#allocation2 + $0x140] sm:$0xff] }
  0x2a   :  { %929 = vmatprep.subr.bf16.mxu1 %v1081_v1  ;;  %946 = vmatpush3.bf16.msra.mxu0 %v945_v18  ;;  %v431_v18 = vld [vmem:[#allocation2 + $0x120] sm:$0xff] }
  0x2b   :  { %947 = vmatprep.subr.bf16.mxu0 %v1081_v1  ;;  %v969_v20 = vpack.c.bf16 %v432_v19, %v431_v18  ;;  %v563_v19 = vld [vmem:[#allocation2 + $0x1a0] sm:$0xff] }
  0x2d   :  { %931 = vmatpush3.bf16.msra.mxu1 %v930_v27  ;;  %v954_v27 = vpack.c.bf16 %v306_v26, %v305_v25  ;;  %v437_v26 = vld [vmem:[#allocation2 + $0x150] sm:$0xff] }
  0x2e   :  { %932 = vmatprep.subr.bf16.mxu1 %v1081_v1  ;;  %949 = vmatpush3.bf16.msra.mxu0 %v948_v21  ;;  %v433_v21 = vld [vmem:[#allocation2 + $0x130] sm:$0xff] }
  0x2f   :  { %950 = vmatprep.subr.bf16.mxu0 %v1081_v1 }
  0x31   :  { %934 = vmatpush3.bf16.msra.mxu1 %v933_v31  ;;  %v309_v31 = vld [vmem:[#allocation2 + $0xf0] sm:$0xff] }
  0x32   :  { %935 = vmatprep.subr.bf16.mxu1 %v1081_v1  ;;  %952 = vmatpush3.bf16.msra.mxu0 %v951_v24  ;;  %v436_v24 = vld [vmem:[#allocation2 + $0x148] sm:$0xff] }
  0x33   :  { %953 = vmatprep.subr.bf16.mxu0 %v1081_v1  ;;  %v975_v25 = vpack.c.bf16 %v436_v24, %v435_v23  ;;  %v567_v24 = vld [vmem:[#allocation2 + $0x1c0] sm:$0xff] }
  0x35   :  { %937 = vmatpush3.bf16.msra.mxu1 %v936_v33  ;;  %v960_v33 = vpack.c.bf16 %v310_v32, %v309_v31  ;;  %v441_v32 = vld [vmem:[#allocation2 + $0x170] sm:$0xff] }
  0x36   :  { %962 = vmatprep.subr.bf16.mxu1 %v1081_v1  ;;  %955 = vmatpush3.bf16.msra.mxu0 %v954_v27  ;;  %v438_v27 = vld [vmem:[#allocation2 + $0x158] sm:$0xff] }
  0x37   :  { %956 = vmatprep.subr.bf16.mxu0 %v1081_v1  ;;  %v978_v28 = vpack.c.bf16 %v438_v27, %v437_v26  ;;  %v569_v27 = vld [vmem:[#allocation2 + $0x1d0] sm:$0xff] }
  0x3a   :  { %958 = vmatpush3.bf16.msra.mxu0 %v957_v30  ;;  %v440_v30 = vld [vmem:[#allocation2 + $0x168] sm:$0xff] }
  0x3b   :  { %959 = vmatprep.subr.bf16.mxu0 %v1081_v1  ;;  %v981_v31 = vpack.c.bf16 %v440_v30, %v439_v29  ;;  %v571_v30 = vld [vmem:[#allocation2 + $0x1e0] sm:$0xff] }
  0x3e   :  { %961 = vmatpush3.bf16.msra.mxu0 %v960_v33  ;;  %v442_v33 = vld [vmem:[#allocation2 + $0x178] sm:$0xff] }
  0x3f   :  { %986 = vmatprep.subr.bf16.mxu0 %v1081_v1 }
  0xf3   :  { %v119_v34 = vpop.f32.mrb[0].mxu0 }
  0xf4   :  { %v124_v35 = vsel %vm49_vm5, %v119_v34, 0.0  ;;  %v131_v36 = vmul.f32 %v119_v34, %v119_v34  ;;  %v770_v37 = vpop.f32.mrb[1].mxu0 }
  0xf5   :  { %v125_v38 = vrot.slane %v124_v35, 4 }
  0xf6   :  { %v132_v39 = vsel %vm49_vm5, %v131_v36, 0.0 }
  0xf7   :  { %v126_v40 = vadd.f32 %v125_v38, %v124_v35  ;;  %v133_v41 = vrot.slane %v132_v39, 4 }
  0xf9   :  { %v127_v42 = vrot.slane %v126_v40, 2  ;;  %v134_v43 = vadd.f32 %v133_v41, %v132_v39 }
  0xfb   :  { %v128_v44 = vadd.f32 %v127_v42, %v126_v40  ;;  %v135_v45 = vrot.slane %v134_v43, 2 }
  0xfd   :  { %v129_v46 = vrot.slane %v128_v44, 1  ;;  %v136_v47 = vadd.f32 %v135_v45, %v134_v43 }
  0xff   :  { %v130_v48 = vadd.f32 %v129_v46, %v128_v44  ;;  %v137_v49 = vrot.slane %v136_v47, 1 }
 0x101   :  { %v138_v50 = vadd.f32 %v137_v49, %v136_v47  ;;  %v139_v51 = vmul.f32 0.25, %v130_v48 }
 0x103   :  { %v140_v52 = vmul.f32 0.25, %v138_v50  ;;  %v141_v53 = vmul.f32 %v139_v51, %v139_v51 }
 0x105   :  { %v142_v54 = vsub.f32 %v140_v52, %v141_v53 }
 0x107   :  { %v143_v55 = vmax.f32 %v142_v54, 0.0 }
 0x109   :  { %v144_v56 = vadd.f32 1e-05, %v143_v55 }
 0x10b   :  { %1018 = vrsqrt.f32 %v144_v56 }
 0x115   :  { %v1019_v58 = vpop.eup %1018 }
 0x116   :  { %v146_v59 = vmul.f32 %v1019_v58, %v123_v57 }
 0x118   :  { %v147_v61 = vmul.f32 %v146_v59, %v139_v51  ;;  %v155_v63 = vrot.slane %v146_v59, %v1157_v60  ;;  %v687_v59 = vld [vmem:[%s1235_s2 + $0x4] sm:$0x7] }
 0x11a   :  { %v149_v62 = vrot.slane %v147_v61, 7  ;;  %v156_v6 = vmul.f32 %v155_v63, %v119_v34  ;;  %v1175_v34 = vsub.s32 0, %v1120_v2 }
 0x11c   :  { %v151_v5 = vsub.f32 %v123_v57, %v149_v62  ;;  %v182_v35 = vrot.slane %v123_v57, %v1175_v34 }
 0x11e   :  { %v160_v7 = vrot.slane %v151_v5, %v1161_v0 }
 0x120   :  { %v161_v8 = vadd.f32 %v160_v7, %v156_v6 }
 0x122   :  { %v162_v9 = vmax.f32 %v161_v8, 0.0 }
 0x124   :  { %804 = vmatmul.mubr.f32.vlgmr.msra.gmra.mrb[0].mxu1 %v162_v9 }
 0x125   :  { %873 = vmatprep.mubr.msk.f32.mxu1 %vm1082_vm0, %v1083_v4  ;;  %964 = vmatpush3.bf16.msra.mxu1 %v963_v14  ;;  %v560_v14 = vld [vmem:[#allocation2 + $0x188] sm:$0xff] }
 0x126   :  { %965 = vmatprep.subr.bf16.mxu1 %v1081_v1  ;;  %v987_v15 = vpack.c.bf16 %v560_v14, %v559_v13 }
 0x129   :  { %967 = vmatpush3.bf16.msra.mxu1 %v966_v17  ;;  %v562_v17 = vld [vmem:[#allocation2 + $0x198] sm:$0xff] }
 0x12a   :  { %968 = vmatprep.subr.bf16.mxu1 %v1081_v1  ;;  %v990_v18 = vpack.c.bf16 %v562_v17, %v561_v16 }
 0x12d   :  { %970 = vmatpush3.bf16.msra.mxu1 %v969_v20  ;;  %v564_v20 = vld [vmem:[#allocation2 + $0x1a8] sm:$0xff] }
 0x12e   :  { %971 = vmatprep.subr.bf16.mxu1 %v1081_v1 }
 0x1f7   :  { %v249_v36 = vpop.f32.mrb[0].mxu1 }
 0x1f8   :  { %v250_v37 = vadd.f32 %v249_v36, %v182_v35  ;;  %v805_v38 = vpop.f32.mrb[1].mxu1  ;;  %v984_v35 = vpack.c.bf16 %v442_v33, %v441_v32  ;;  %v314_v36 = vrot.slane %v687_v59, %v1175_v34  ;;  %v573_v33 = vld [vmem:[#allocation2 + $0x1f0] sm:$0xff] }
 0x1fa   :  { %v255_v39 = vsel %vm49_vm5, %v250_v37, 0.0  ;;  %v262_v40 = vmul.f32 %v250_v37, %v250_v37 }
 0x1fb   :  { %v256_v41 = vrot.slane %v255_v39, 4 }
 0x1fc   :  { %v263_v42 = vsel %vm49_vm5, %v262_v40, 0.0 }
 0x1fd   :  { %v257_v43 = vadd.f32 %v256_v41, %v255_v39  ;;  %v264_v44 = vrot.slane %v263_v42, 4 }
 0x1ff   :  { %v258_v45 = vrot.slane %v257_v43, 2  ;;  %v265_v46 = vadd.f32 %v264_v44, %v263_v42 }
 0x201   :  { %v259_v47 = vadd.f32 %v258_v45, %v257_v43  ;;  %v266_v48 = vrot.slane %v265_v46, 2 }
 0x203   :  { %v260_v49 = vrot.slane %v259_v47, 1  ;;  %v267_v2 = vadd.f32 %v266_v48, %v265_v46 }
 0x205   :  { %v261_v50 = vadd.f32 %v260_v49, %v259_v47  ;;  %v268_v51 = vrot.slane %v267_v2, 1 }
 0x207   :  { %v269_v52 = vadd.f32 %v268_v51, %v267_v2  ;;  %v270_v53 = vmul.f32 0.25, %v261_v50 }
 0x209   :  { %v271_v54 = vmul.f32 0.25, %v269_v52  ;;  %v272_v55 = vmul.f32 %v270_v53, %v270_v53 }
 0x20b   :  { %v273_v56 = vsub.f32 %v271_v54, %v272_v55 }
 0x20d   :  { %v274_v57 = vmax.f32 %v273_v56, 0.0 }
 0x20f   :  { %v275_v58 = vadd.f32 1e-05, %v274_v57 }
 0x211   :  { %1020 = vrsqrt.f32 %v275_v58 }
 0x21b   :  { %v1021_v61 = vpop.eup %1020 }
 0x21c   :  { %v277_v62 = vmul.f32 %v1021_v61, %v687_v59  ;;  %v688_v61 = vld [vmem:[%s1235_s2 + $0x8] sm:$0x7] }
 0x21e   :  { %v278_v63 = vmul.f32 %v277_v62, %v270_v53  ;;  %v286_v6 = vrot.slane %v277_v62, %v1157_v60 }
 0x220   :  { %v280_v5 = vrot.slane %v278_v63, 7  ;;  %v287_v8 = vmul.f32 %v286_v6, %v250_v37 }
 0x222   :  { %v282_v7 = vsub.f32 %v687_v59, %v280_v5 }
 0x224   :  { %v291_v9 = vrot.slane %v282_v7, %v1161_v0 }
 0x226   :  { %v292_v10 = vadd.f32 %v291_v9, %v287_v8 }
 0x228   :  { %v293_v11 = vmax.f32 %v292_v10, 0.0 }
 0x22a   :  { %839 = vmatmul.mubr.f32.vlgmr.msra.gmra.mrb[2].mxu0 %v293_v11 }
 0x22b   :  { %908 = vmatprep.mubr.msk.f32.mxu0 %vm1082_vm0, %v1083_v4  ;;  %v434_v4 = vld [vmem:[#allocation2 + $0x138] sm:$0xff]  ;;  %988 = vmatpush3.bf16.msra.mxu0 %v987_v15 }
 0x22c   :  { %v972_v22 = vpack.c.bf16 %v434_v4, %v433_v21  ;;  %989 = vmatprep.subr.bf16.mxu0 %v1081_v1  ;;  %v993_v21 = vpack.c.bf16 %v564_v20, %v563_v19  ;;  %v565_v4 = vld [vmem:[#allocation2 + $0x1b0] sm:$0xff] }
 0x22e   :  { %973 = vmatpush3.bf16.msra.mxu1 %v972_v22  ;;  %v566_v22 = vld [vmem:[#allocation2 + $0x1b8] sm:$0xff] }
 0x22f   :  { %974 = vmatprep.subr.bf16.mxu1 %v1081_v1  ;;  %991 = vmatpush3.bf16.msra.mxu0 %v990_v18  ;;  %v996_v23 = vpack.c.bf16 %v566_v22, %v565_v4 }
 0x230   :  { %992 = vmatprep.subr.bf16.mxu0 %v1081_v1 }
 0x232   :  { %976 = vmatpush3.bf16.msra.mxu1 %v975_v25  ;;  %v568_v25 = vld [vmem:[#allocation2 + $0x1c8] sm:$0xff] }
 0x233   :  { %977 = vmatprep.subr.bf16.mxu1 %v1081_v1  ;;  %994 = vmatpush3.bf16.msra.mxu0 %v993_v21  ;;  %v999_v26 = vpack.c.bf16 %v568_v25, %v567_v24 }
 0x234   :  { %995 = vmatprep.subr.bf16.mxu0 %v1081_v1 }
 0x236   :  { %979 = vmatpush3.bf16.msra.mxu1 %v978_v28  ;;  %v570_v28 = vld [vmem:[#allocation2 + $0x1d8] sm:$0xff] }
 0x237   :  { %980 = vmatprep.subr.bf16.mxu1 %v1081_v1  ;;  %997 = vmatpush3.bf16.msra.mxu0 %v996_v23  ;;  %v1002_v29 = vpack.c.bf16 %v570_v28, %v569_v27 }
 0x238   :  { %998 = vmatprep.subr.bf16.mxu0 %v1081_v1 }
 0x23a   :  { %982 = vmatpush3.bf16.msra.mxu1 %v981_v31  ;;  %v572_v31 = vld [vmem:[#allocation2 + $0x1e8] sm:$0xff] }
 0x23b   :  { %983 = vmatprep.subr.bf16.mxu1 %v1081_v1  ;;  %1000 = vmatpush3.bf16.msra.mxu0 %v999_v26  ;;  %v1005_v32 = vpack.c.bf16 %v572_v31, %v571_v30 }
 0x23c   :  { %1001 = vmatprep.subr.bf16.mxu0 %v1081_v1 }
 0x23e   :  { %985 = vmatpush3.bf16.msra.mxu1 %v984_v35  ;;  %v574_v35 = vld [vmem:[#allocation2 + $0x1f8] sm:$0xff] }
 0x23f   :  { %1003 = vmatpush3.bf16.msra.mxu0 %v1002_v29 }
 0x240   :  { %1004 = vmatprep.subr.bf16.mxu0 %v1081_v1 }
 0x243   :  { %1006 = vmatpush3.bf16.msra.mxu0 %v1005_v32 }
 0x244   :  { %1007 = vmatprep.subr.bf16.mxu0 %v1081_v1 }
 0x2fd   :  { %v381_v37 = vpop.f32.mrb[2].mxu0 }
 0x2fe   :  { %v382_v38 = vadd.f32 %v381_v37, %v314_v36  ;;  %v840_v39 = vpop.f32.mrb[3].mxu0  ;;  %v1008_v36 = vpack.c.bf16 %v574_v35, %v573_v33  ;;  %v446_v37 = vrot.slane %v688_v61, %v1175_v34 }
 0x300   :  { %v387_v40 = vsel %vm49_vm5, %v382_v38, 0.0  ;;  %v394_v41 = vmul.f32 %v382_v38, %v382_v38  ;;  %1009 = vmatpush3.bf16.msra.mxu0 %v1008_v36 }
 0x301   :  { %v388_v42 = vrot.slane %v387_v40, 4 }
 0x302   :  { %v395_v43 = vsel %vm49_vm5, %v394_v41, 0.0 }
 0x303   :  { %v389_v44 = vadd.f32 %v388_v42, %v387_v40  ;;  %v396_v45 = vrot.slane %v395_v43, 4 }
 0x305   :  { %v390_v46 = vrot.slane %v389_v44, 2  ;;  %v397_v47 = vadd.f32 %v396_v45, %v395_v43 }
 0x307   :  { %v391_v48 = vadd.f32 %v390_v46, %v389_v44  ;;  %v398_v49 = vrot.slane %v397_v47, 2 }
 0x309   :  { %v392_v2 = vrot.slane %v391_v48, 1  ;;  %v399_v50 = vadd.f32 %v398_v49, %v397_v47 }
 0x30b   :  { %v393_v51 = vadd.f32 %v392_v2, %v391_v48  ;;  %v400_v52 = vrot.slane %v399_v50, 1 }
 0x30d   :  { %v401_v53 = vadd.f32 %v400_v52, %v399_v50  ;;  %v402_v54 = vmul.f32 0.25, %v393_v51 }
 0x30f   :  { %v403_v55 = vmul.f32 0.25, %v401_v53  ;;  %v404_v56 = vmul.f32 %v402_v54, %v402_v54 }
 0x311   :  { %v405_v57 = vsub.f32 %v403_v55, %v404_v56 }
 0x313   :  { %v406_v58 = vmax.f32 %v405_v57, 0.0 }
 0x315   :  { %v407_v59 = vadd.f32 1e-05, %v406_v58 }
 0x317   :  { %1022 = vrsqrt.f32 %v407_v59 }
 0x321   :  { %v1023_v62 = vpop.eup %1022 }
 0x322   :  { %v409_v63 = vmul.f32 %v1023_v62, %v688_v61 }
 0x324   :  { %v410_v5 = vmul.f32 %v409_v63, %v402_v54  ;;  %v418_v7 = vrot.slane %v409_v63, %v1157_v60 }
 0x326   :  { %v412_v6 = vrot.slane %v410_v5, 7  ;;  %v419_v9 = vmul.f32 %v418_v7, %v382_v38 }
 0x328   :  { %v414_v8 = vsub.f32 %v688_v61, %v412_v6  ;;  %v689_v61 = vld [vmem:[%s1235_s2 + $0xc] sm:$0x7]  ;;  %s1085_s2 = smov [#allocation5]  }
 0x329   :  { %v578_v13 = vrot.slane %v689_v61, %v1175_v34  ;;  %s671_s7 = sshll.u32 %s1085_s2, 4  ;;  %s672_s7 = int_to_ptr.vmem [resolvable:$true] %s671_s7 }
 0x32a   :  { %v423_v10 = vrot.slane %v414_v8, %v1161_v0  ;;  %s1052_s8 = scalar_lea.vmem %s672_s7, 64  ;;  %p1057_p9 = scmp.lt.s32.totalorder %s672_s7, %s672_s7 }
 0x32b   :  { %p1053_p8 = scmp.ne.s32.totalorder %s672_s7, %s1052_s8  ;;  %p1058_p10 = scmp.lt.s32.totalorder %s1052_s8, %s1052_s8 }
 0x32c   :  { %v424_v11 = vadd.f32 %v423_v10, %v419_v9 }
 0x32d   :  { %p1059_p11 = por %p1058_p10, %p1057_p9 }
 0x32e   :  { %v425_v12 = vmax.f32 %v424_v11, 0.0 }
 0x32f   :  { %p1060_p12 = pnand %p1059_p11, %p1053_p8 }
 0x330   :  { %874 = vmatmul.mubr.f32.vlgmr.msra.gmra.mrb[2].mxu1 %v425_v12 }
 0x403   :  { %v513_v38 = vpop.f32.mrb[2].mxu1 }
 0x404   :  { %v514_v39 = vadd.f32 %v513_v38, %v446_v37  ;;  %v875_v40 = vpop.f32.mrb[3].mxu1 }
 0x406   :  { %v519_v41 = vsel %vm49_vm5, %v514_v39, 0.0  ;;  %v526_v42 = vmul.f32 %v514_v39, %v514_v39 }
 0x407   :  { %v520_v43 = vrot.slane %v519_v41, 4 }
 0x408   :  { %v527_v44 = vsel %vm49_vm5, %v526_v42, 0.0 }
 0x409   :  { %v521_v45 = vadd.f32 %v520_v43, %v519_v41  ;;  %v528_v46 = vrot.slane %v527_v44, 4 }
 0x40b   :  { %v522_v47 = vrot.slane %v521_v45, 2  ;;  %v529_v48 = vadd.f32 %v528_v46, %v527_v44 }
 0x40d   :  { %v523_v1 = vadd.f32 %v522_v47, %v521_v45  ;;  %v530_v49 = vrot.slane %v529_v48, 2 }
 0x40f   :  { %v524_v2 = vrot.slane %v523_v1, 1  ;;  %v531_v50 = vadd.f32 %v530_v49, %v529_v48 }
 0x411   :  { %v525_v51 = vadd.f32 %v524_v2, %v523_v1  ;;  %v532_v52 = vrot.slane %v531_v50, 1 }
 0x413   :  { %v533_v53 = vadd.f32 %v532_v52, %v531_v50  ;;  %v534_v54 = vmul.f32 0.25, %v525_v51 }
 0x415   :  { %v535_v55 = vmul.f32 0.25, %v533_v53  ;;  %v536_v56 = vmul.f32 %v534_v54, %v534_v54 }
 0x417   :  { %v537_v57 = vsub.f32 %v535_v55, %v536_v56 }
 0x419   :  { %v538_v58 = vmax.f32 %v537_v57, 0.0 }
 0x41b   :  { %v539_v59 = vadd.f32 1e-05, %v538_v58 }
 0x41d   :  { %1024 = vrsqrt.f32 %v539_v59 }
 0x427   :  { %v1025_v62 = vpop.eup %1024 }
 0x428   :  { %v541_v63 = vmul.f32 %v1025_v62, %v689_v61 }
 0x42a   :  { %v542_v5 = vmul.f32 %v541_v63, %v534_v54  ;;  %v550_v7 = vrot.slane %v541_v63, %v1157_v60 }
 0x42c   :  { %v544_v6 = vrot.slane %v542_v5, 7  ;;  %v551_v9 = vmul.f32 %v550_v7, %v514_v39 }
 0x42e   :  { %v546_v8 = vsub.f32 %v689_v61, %v544_v6 }
 0x430   :  { %v555_v10 = vrot.slane %v546_v8, %v1161_v0 }
 0x432   :  { %v556_v11 = vadd.f32 %v555_v10, %v551_v9 }
 0x434   :  { %v557_v12 = vmax.f32 %v556_v11, 0.0 }
 0x436   :  { %909 = vmatmul.mubr.f32.vlgmr.msra.gmra.mrb[4].mxu0 %v557_v12 }
 0x509   :  { %v645_v14 = vpop.f32.mrb[4].mxu0 }
 0x50a   :  { %v646_v15 = vadd.f32 %v645_v14, %v578_v13  ;;  %v910_v16 = vpop.f32.mrb[5].mxu0 }
 0x50c   :  { %v650_v17 = vsel %vm649_vm7, %v646_v15, -1e+30 }
 0x50d   :  { %v651_v18 = vsel %vm49_vm5, %v650_v17, -inf }
 0x50e   :  { %652 = vmax.xlane.f32.xlu0 %v651_v18 }
 0x59b   :  { %v653_v19 = vpop.xlane.xlu0 %652 }
 0x59c   :  { %v654_v60 = vsub.f32 %v650_v17, %v653_v19 }
 0x59e   :  { %v655_v20 = vmul.f32 1.442695, %v654_v60 }
 0x5a0   :  { %1026 = vpow2.f32 %v655_v20 }
 0x5aa   :  { %v1027_v21 = vpop.eup %1026 }
 0x5ab   :  { %v657_v0 = vsel %vm49_vm5, %v1027_v21, 0.0 }
 0x5ac   :  { %658 = vadd.xlane.f32.xlu0 %v657_v0 }
 0x639   :  { %v659_v4 = vpop.xlane.xlu0 %658 }
 0x63a   :  { %1028 = vlog2.f32 %v659_v4 }
 0x644   :  { %v1029_v34 = vpop.eup %1028 }
 0x645   :  { %v661_v22 = vmul.f32 0.6931472, %v1029_v34 }
 0x647   :  { %v662_v3 = vadd.f32 %v661_v22, %v653_v19 }
 0x649   :  { %v663_v23 = vsub.f32 %v646_v15, %v662_v3 }
 0x64b   :  { %664 = vst [vmem:[#allocation5] sm:$0xf] %v663_v23 }
 0x64c   :  { %1063 = shalt.err (!%p1060_p12)
}
 0x64d   :  { %s1064_s11 = scalar_lea.hbm %s1236_s3, 64 }
 0x64e   :  { %p1065_p13 = scmp.ne.s32.totalorder %s1236_s3, %s1064_s11  ;;  %p1068_p0 = scmp.lt.u32.totalorder %s1064_s11, %s1236_s3 }
 0x650   :  { %p1070_p1 = pnand %p1068_p0, %p1065_p13 }
 0x652   :  { %1073 = shalt.err (!%p1070_p1)
}
 0x653   :  { %674 = dma.vmem_to_hbm [thread:$0]  %s672_s7, 64, %s1236_s3, [#allocation4]  }
 0x654   :  { %1076 = dma.done.wait [#allocation4], 64  }
 0x655   :  { %1077 = vsyncadd [#allocation4], 4294967232 }
 0x656   :  { %678 = vsyncpa [#allocation3], 1 }
 0x657   :  { %679 = vsyncpa [#allocation4], 1 }

</bundles_post_ra>
